<compile_context>
chip_gen: v7x
topology: tpu7x:2x2x1
jax: 0.10.0
libtpu: 0.0.40
codegen_flags: <defaults>
</compile_context>

<pallas_src>
import functools

import jax
import jax.numpy as jnp
from jax.experimental import pallas as pl
from jax.experimental.pallas import tpu as pltpu


def _round_up(x, m):
    return (x + m - 1) // m * m


# ---------------------------------------------------------------------------
# Phase 1: per-vocab prep kernel (grid-invariant work, run once per vocab chunk)
# ---------------------------------------------------------------------------
def _prep_kernel(max_norm_1, max_norm_2,
                 e1_ref, e2_ref, w1a_ref, w1b_ref, w2a_ref, w2b_ref, b_ref,
                 c1_ref, c2_ref):
    """Refs:
      e1_ref : (TV, E1)   emb1 rows (native dtype)
      e2_ref : (TV, E2)   emb2 rows (native dtype)
      w1a/w1b/w2a/w2b : (1, E1|E2) f32 classifier-weight segments
      b_ref  : (1, 1) f32 classifier bias (SMEM)
      c1_ref, c2_ref : (TV, 1) f32 per-vocab partial logits
    """
    t1 = e1_ref[...].astype(jnp.float32)          # (TV, E1)
    t2 = e2_ref[...].astype(jnp.float32)          # (TV, E2)

    # torch renorm_ semantics: scale row by max_norm/norm only when norm>max_norm.
    # (torch adds 1e-7 to the denominator; dropping it changes the scale by
    #  < 1e-7 relative — far below the 1e-5 tolerance.)
    def renorm_scale(x, max_norm):
        ss = jnp.sum(x * x, axis=1, keepdims=True)            # (TV, 1)
        inv_norm = jax.lax.rsqrt(jnp.maximum(ss, 1e-30))      # EUP, inf-safe
        return jnp.where(ss > max_norm * max_norm, max_norm * inv_norm, 1.0)

    t1r = t1 * renorm_scale(t1, max_norm_1)
    t2r = t2 * renorm_scale(t2, max_norm_2)

    w1a = w1a_ref[...]
    w1b = w1b_ref[...]
    w2a = w2a_ref[...]
    w2b = w2b_ref[...]

    # VPU multiply + lane reduce (replaces the degenerate (D,1) MXU matmul).
    c1_ref[...] = (jnp.sum(t1r * w1a, axis=1, keepdims=True)
                   + jnp.sum(t2r * w1b, axis=1, keepdims=True)
                   + b_ref[0, 0])                 # bias folded into c1
    c2_ref[...] = (jnp.sum(t1r * w2a, axis=1, keepdims=True)
                   + jnp.sum(t2r * w2b, axis=1, keepdims=True))


# ---------------------------------------------------------------------------
# Phase 2: per-batch-tile gather kernel (one-hot select + reduce + sigmoid)
# ---------------------------------------------------------------------------
def _gather_kernel(tv, w1_ref, w2_ref, c1_ref, c2_ref, o_ref, acc_ref):
    """Grid = (batch tiles [parallel], vocab chunks [arbitrary]).

    Refs:
      w1_ref, w2_ref : (1, 1, TB) int32  token indices, batch on lanes
      c1_ref, c2_ref : (tv, 1) f32       per-vocab partial logits (this chunk)
      o_ref          : (1, 1, TB) f32    sigmoid outputs, lane-dense
      acc_ref        : (1, TB) f32       VMEM accumulator across vocab chunks
    """
    kv = pl.program_id(1)

    @pl.when(kv == 0)
    def _():
        acc_ref[...] = jnp.zeros_like(acc_ref)

    tb = w1_ref.shape[-1]
    idx1 = w1_ref[0]                              # (1, TB) int32
    idx2 = w2_ref[0]
    vocab_ids = kv * tv + jax.lax.broadcasted_iota(jnp.int32, (tv, tb), 0)

    # Fused one-hot gather for both words: exactly one row matches per lane
    # per word, so a single masked select + one sublane reduce suffices.
    contrib = (jnp.where(vocab_ids == idx1, c1_ref[...], 0.0)
               + jnp.where(vocab_ids == idx2, c2_ref[...], 0.0))   # (tv, TB)
    acc_ref[...] += jnp.sum(contrib, axis=0, keepdims=True)        # (1, TB)

    @pl.when(kv == pl.num_programs(1) - 1)
    def _():
        o_ref[0] = jax.nn.sigmoid(acc_ref[...])   # lane-dense store


# ---------------------------------------------------------------------------
# Wrapper
# ---------------------------------------------------------------------------
def finetune_forward(word1, word2, emb1_w, emb2_w, lin_w, lin_b, *,
                     max_norm_2, tb=None, tv=None):
    """word1, word2: integer (B,) token indices. Returns float32 (B,)."""
    B = word1.shape[0]
    V, E1 = emb1_w.shape
    V2, E2 = emb2_w.shape
    assert V == V2
    E = E1 + E2
    D = 2 * E
    assert lin_w.shape == (1, D)
    f32 = jnp.float32

    # ---- vocab tiling: bound the (tv, tb) one-hot temporaries ----
    if tv is None:
        tv = _round_up(V, 8) if V <= 1024 else 1024
    assert tv % 8 == 0
    V_pad = _round_up(V, tv)
    GV = V_pad // tv

    # ---- batch tiling: lane-dense (multiple of 128); for large B pick tb so
    #      there are >= 2 tiles and the parallel axis spans both v7x cores ----
    if tb is None:
        tb = max(128, min(512, _round_up((B + 1) // 2, 128)))
    assert tb % 128 == 0
    B_pad = _round_up(B, tb)
    GB = B_pad // tb

    # ---- weight prep (hoisted, tiny, done once per model) ----
    emb1_p = jnp.pad(emb1_w, ((0, V_pad - V), (0, 0)))     # native dtype
    emb2_p = jnp.pad(emb2_w, ((0, V_pad - V), (0, 0)))
    w1a = lin_w[:, 0:E1].astype(f32)            # pre-split: no in-kernel
    w1b = lin_w[:, E1:E].astype(f32)            # lane slicing at offset E1
    w2a = lin_w[:, E:E + E1].astype(f32)
    w2b = lin_w[:, E + E1:D].astype(f32)
    bias = lin_b.reshape(1, 1).astype(f32)

    vmem_cap = 32 * 1024 * 1024

    # ---- phase 1: per-vocab partial logits (run once) ----
    prep = functools.partial(_prep_kernel, 1.0, float(max_norm_2))
    c1, c2 = pl.pallas_call(
        prep,
        out_shape=(jax.ShapeDtypeStruct((V_pad, 1), f32),
                   jax.ShapeDtypeStruct((V_pad, 1), f32)),
        grid=(GV,),
        in_specs=[
            pl.BlockSpec((tv, E1), lambda j: (j, 0)),           # emb1 chunk
            pl.BlockSpec((tv, E2), lambda j: (j, 0)),           # emb2 chunk
            pl.BlockSpec((1, E1), lambda j: (0, 0)),            # w[0:E1]
            pl.BlockSpec((1, E2), lambda j: (0, 0)),            # w[E1:E]
            pl.BlockSpec((1, E1), lambda j: (0, 0)),            # w[E:E+E1]
            pl.BlockSpec((1, E2), lambda j: (0, 0)),            # w[E+E1:2E]
            pl.BlockSpec(memory_space=pltpu.MemorySpace.SMEM),  # bias scalar
        ],
        out_specs=(pl.BlockSpec((tv, 1), lambda j: (j, 0)),
                   pl.BlockSpec((tv, 1), lambda j: (j, 0))),
        compiler_params=pltpu.CompilerParams(
            dimension_semantics=("parallel",),
            vmem_limit_bytes=vmem_cap),
    )(emb1_p, emb2_p, w1a, w1b, w2a, w2b, bias)

    # ---- phase 2: batched gather + sigmoid ----
    def prep_idx(w):
        w = w.astype(jnp.int32)
        w = jnp.pad(w, (0, B_pad - B))          # pad with index 0 (valid row)
        return w.reshape(GB, 1, tb)

    w1 = prep_idx(word1)
    w2 = prep_idx(word2)

    gather = functools.partial(_gather_kernel, tv)
    out = pl.pallas_call(
        gather,
        out_shape=jax.ShapeDtypeStruct((GB, 1, tb), f32),
        grid_spec=pltpu.PrefetchScalarGridSpec(
            num_scalar_prefetch=0,
            grid=(GB, GV),
            in_specs=[
                pl.BlockSpec((1, 1, tb), lambda i, j: (i, 0, 0)),  # word1 idx
                pl.BlockSpec((1, 1, tb), lambda i, j: (i, 0, 0)),  # word2 idx
                pl.BlockSpec((tv, 1), lambda i, j: (j, 0)),        # c1 chunk
                pl.BlockSpec((tv, 1), lambda i, j: (j, 0)),        # c2 chunk
            ],
            out_specs=pl.BlockSpec((1, 1, tb), lambda i, j: (i, 0, 0)),
            scratch_shapes=[pltpu.VMEM((1, tb), f32)],
        ),
        compiler_params=pltpu.CompilerParams(
            dimension_semantics=("parallel", "arbitrary"),
            vmem_limit_bytes=vmem_cap),
    )(w1, w2, c1, c2)

    # Matches torch's x.squeeze() for B > 1 (torch returns a 0-d tensor for B==1).
    return out.reshape(B_pad)[:B]


# ---------------------------------------------------------------------------
# Pure-JAX reference
# ---------------------------------------------------------------------------
def _reference(word1, word2, emb1_w, emb2_w, lin_w, lin_b, max_norm_2):
    def renorm(x, m):
        n = jnp.sqrt(jnp.sum(x * x, axis=-1, keepdims=True))
        return x * jnp.where(n > m, m / (n + 1e-7), 1.0)

    x1 = jnp.concatenate([renorm(emb1_w[word1], 1.0),
                          renorm(emb2_w[word1], max_norm_2)], axis=1)
    x2 = jnp.concatenate([renorm(emb1_w[word2], 1.0),
                          renorm(emb2_w[word2], max_norm_2)], axis=1)
    x = jnp.concatenate([x1, x2], axis=1)
    # Exact f32 sum-product (avoids XLA's reduced-precision f32 MXU dot so the
    # tolerance check is meaningful).
    logit = jnp.sum(x * lin_w[0], axis=-1) + lin_b[0]
    return jax.nn.sigmoid(logit)


if __name__ == "__main__":
    # Small, deterministic configuration.
    #   B=200 with tb=128 exercises batch padding and a 2-tile parallel axis.
    #   V=32 with tv=8 exercises the 4-chunk accumulating vocab axis.
    VOCAB = 32
    E1 = 16
    E2 = 16
    B = 200
    MAX_NORM_2 = 2.0
    D = 2 * (E1 + E2)

    key = jax.random.PRNGKey(0)
    k_emb1, k_emb2, k_w, k_b, k_i1, k_i2 = jax.random.split(key, 6)

    # embeddings_1.weight <- provided `embedding` (frozen); synthesize it.
    emb1_w = jax.random.normal(k_emb1, (VOCAB, E1), dtype=jnp.float32)
    # embeddings_2.weight is constant 0 at construction; use non-zero values
    # here (as after finetuning) so the max_norm_2 renorm path is exercised.
    emb2_w = jax.random.normal(k_emb2, (VOCAB, E2), dtype=jnp.float32)

    # nn.Linear(D, 1) default init: U(-1/sqrt(D), 1/sqrt(D))
    bound = 1.0 / jnp.sqrt(jnp.float32(D))
    lin_w = jax.random.uniform(k_w, (1, D), jnp.float32, -bound, bound)
    lin_b = jax.random.uniform(k_b, (1,), jnp.float32, -bound, bound)

    word1 = jax.random.randint(k_i1, (B,), 0, VOCAB, dtype=jnp.int32)
    word2 = jax.random.randint(k_i2, (B,), 0, VOCAB, dtype=jnp.int32)

    out = finetune_forward(word1, word2, emb1_w, emb2_w, lin_w, lin_b,
                           max_norm_2=MAX_NORM_2, tb=128, tv=8)
    out = jax.block_until_ready(out)

    ref = _reference(word1, word2, emb1_w, emb2_w, lin_w, lin_b, MAX_NORM_2)
    assert out.shape == (B,)
    assert jnp.allclose(out, ref, atol=1e-5, rtol=1e-5), (out, ref)

    print("KERNEL_OK")
</pallas_src>

<mosaic_0001>
module attributes {stable_mosaic.version = 11 : i64} {
  func.func @_prep_kernel(%arg0: i32, %arg1: memref<8x16xf32, #tpu.memory_space<vmem>>, %arg2: memref<8x16xf32, #tpu.memory_space<vmem>>, %arg3: memref<1x16xf32, #tpu.memory_space<vmem>>, %arg4: memref<1x16xf32, #tpu.memory_space<vmem>>, %arg5: memref<1x16xf32, #tpu.memory_space<vmem>>, %arg6: memref<1x16xf32, #tpu.memory_space<vmem>>, %arg7: memref<1x1xf32, #tpu.memory_space<smem>>, %arg8: memref<8x1xf32, #tpu.memory_space<vmem>>, %arg9: memref<8x1xf32, #tpu.memory_space<vmem>>) attributes {dimension_semantics = [#tpu.dimension_semantics<parallel>], iteration_bounds = array<i64: 4>, scalar_prefetch = 0 : i64, scratch_operands = 0 : i64, tpu.core_type = #tpu.core_type<tc>, window_params = [{transform_indices = @transform_0, window_bounds = array<i64: 8, 16>}, {transform_indices = @transform_1, window_bounds = array<i64: 8, 16>}, {pipeline_mode = #tpu.pipeline_mode<synchronous>, transform_indices = @transform_2, window_bounds = array<i64: 1, 16>}, {pipeline_mode = #tpu.pipeline_mode<synchronous>, transform_indices = @transform_3, window_bounds = array<i64: 1, 16>}, {pipeline_mode = #tpu.pipeline_mode<synchronous>, transform_indices = @transform_4, window_bounds = array<i64: 1, 16>}, {pipeline_mode = #tpu.pipeline_mode<synchronous>, transform_indices = @transform_5, window_bounds = array<i64: 1, 16>}, {transform_indices = @transform_6, window_bounds = array<i64: 1, 1>}, {transform_indices = @transform_7, window_bounds = array<i64: 8, 1>}, {transform_indices = @transform_8, window_bounds = array<i64: 8, 1>}]} {
    %c0 = arith.constant 0 : index
    %c0_0 = arith.constant 0 : index
    %0 = vector.load %arg1[%c0, %c0_0] : memref<8x16xf32, #tpu.memory_space<vmem>>, vector<8x16xf32>
    %c0_1 = arith.constant 0 : index
    %c0_2 = arith.constant 0 : index
    %1 = vector.load %arg2[%c0_1, %c0_2] : memref<8x16xf32, #tpu.memory_space<vmem>>, vector<8x16xf32>
    %2 = arith.mulf %0, %0 : vector<8x16xf32>
    %cst = arith.constant dense<0.000000e+00> : vector<8xf32>
    %3 = vector.multi_reduction <add>, %2, %cst [1] : vector<8x16xf32> to vector<8xf32>
    %4 = vector.shape_cast %3 : vector<8xf32> to vector<8x1xf32>
    %cst_3 = arith.constant 1.000000e-30 : f32
    %5 = vector.broadcast %cst_3 : f32 to vector<8x1xf32>
    %6 = arith.maximumf %4, %5 : vector<8x1xf32>
    %7 = math.rsqrt %6 : vector<8x1xf32>
    %cst_4 = arith.constant 1.000000e+00 : f32
    %8 = vector.broadcast %cst_4 : f32 to vector<8x1xf32>
    %9 = arith.cmpf ogt, %4, %8 : vector<8x1xf32>
    %cst_5 = arith.constant 1.000000e+00 : f32
    %10 = vector.broadcast %cst_5 : f32 to vector<8x1xf32>
    %11 = arith.mulf %10, %7 : vector<8x1xf32>
    %cst_6 = arith.constant 1.000000e+00 : f32
    %12 = vector.broadcast %cst_6 : f32 to vector<8x1xf32>
    %13 = arith.select %9, %11, %12 : vector<8x1xi1>, vector<8x1xf32>
    %14 = vector.broadcast %13 : vector<8x1xf32> to vector<8x16xf32>
    %15 = arith.mulf %0, %14 : vector<8x16xf32>
    %16 = arith.mulf %1, %1 : vector<8x16xf32>
    %cst_7 = arith.constant dense<0.000000e+00> : vector<8xf32>
    %17 = vector.multi_reduction <add>, %16, %cst_7 [1] : vector<8x16xf32> to vector<8xf32>
    %18 = vector.shape_cast %17 : vector<8xf32> to vector<8x1xf32>
    %cst_8 = arith.constant 1.000000e-30 : f32
    %19 = vector.broadcast %cst_8 : f32 to vector<8x1xf32>
    %20 = arith.maximumf %18, %19 : vector<8x1xf32>
    %21 = math.rsqrt %20 : vector<8x1xf32>
    %cst_9 = arith.constant 4.000000e+00 : f32
    %22 = vector.broadcast %cst_9 : f32 to vector<8x1xf32>
    %23 = arith.cmpf ogt, %18, %22 : vector<8x1xf32>
    %cst_10 = arith.constant 2.000000e+00 : f32
    %24 = vector.broadcast %cst_10 : f32 to vector<8x1xf32>
    %25 = arith.mulf %24, %21 : vector<8x1xf32>
    %cst_11 = arith.constant 1.000000e+00 : f32
    %26 = vector.broadcast %cst_11 : f32 to vector<8x1xf32>
    %27 = arith.select %23, %25, %26 : vector<8x1xi1>, vector<8x1xf32>
    %28 = vector.broadcast %27 : vector<8x1xf32> to vector<8x16xf32>
    %29 = arith.mulf %1, %28 : vector<8x16xf32>
    %c0_12 = arith.constant 0 : index
    %c0_13 = arith.constant 0 : index
    %30 = vector.load %arg3[%c0_12, %c0_13] : memref<1x16xf32, #tpu.memory_space<vmem>>, vector<1x16xf32>
    %c0_14 = arith.constant 0 : index
    %c0_15 = arith.constant 0 : index
    %31 = vector.load %arg4[%c0_14, %c0_15] : memref<1x16xf32, #tpu.memory_space<vmem>>, vector<1x16xf32>
    %c0_16 = arith.constant 0 : index
    %c0_17 = arith.constant 0 : index
    %32 = vector.load %arg5[%c0_16, %c0_17] : memref<1x16xf32, #tpu.memory_space<vmem>>, vector<1x16xf32>
    %c0_18 = arith.constant 0 : index
    %c0_19 = arith.constant 0 : index
    %33 = vector.load %arg6[%c0_18, %c0_19] : memref<1x16xf32, #tpu.memory_space<vmem>>, vector<1x16xf32>
    %34 = vector.broadcast %30 : vector<1x16xf32> to vector<8x16xf32>
    %35 = arith.mulf %15, %34 : vector<8x16xf32>
    %cst_20 = arith.constant dense<0.000000e+00> : vector<8xf32>
    %36 = vector.multi_reduction <add>, %35, %cst_20 [1] : vector<8x16xf32> to vector<8xf32>
    %37 = vector.shape_cast %36 : vector<8xf32> to vector<8x1xf32>
    %38 = vector.broadcast %31 : vector<1x16xf32> to vector<8x16xf32>
    %39 = arith.mulf %29, %38 : vector<8x16xf32>
    %cst_21 = arith.constant dense<0.000000e+00> : vector<8xf32>
    %40 = vector.multi_reduction <add>, %39, %cst_21 [1] : vector<8x16xf32> to vector<8xf32>
    %41 = vector.shape_cast %40 : vector<8xf32> to vector<8x1xf32>
    %42 = arith.addf %37, %41 : vector<8x1xf32>
    %c0_22 = arith.constant 0 : index
    %c0_23 = arith.constant 0 : index
    %43 = memref.load %arg7[%c0_22, %c0_23] : memref<1x1xf32, #tpu.memory_space<smem>>
    %44 = vector.broadcast %43 : f32 to vector<8x1xf32>
    %45 = arith.addf %42, %44 : vector<8x1xf32>
    %c0_24 = arith.constant 0 : index
    %c0_25 = arith.constant 0 : index
    %46 = vector.load %arg8[%c0_24, %c0_25] : memref<8x1xf32, #tpu.memory_space<vmem>>, vector<8x1xf32>
    tpu.vector_store %arg8[%c0_24, %c0_25], %45 {strides = array<i32>} : memref<8x1xf32, #tpu.memory_space<vmem>>, vector<8x1xf32>,
    %47 = vector.broadcast %32 : vector<1x16xf32> to vector<8x16xf32>
    %48 = arith.mulf %15, %47 : vector<8x16xf32>
    %cst_26 = arith.constant dense<0.000000e+00> : vector<8xf32>
    %49 = vector.multi_reduction <add>, %48, %cst_26 [1] : vector<8x16xf32> to vector<8xf32>
    %50 = vector.shape_cast %49 : vector<8xf32> to vector<8x1xf32>
    %51 = vector.broadcast %33 : vector<1x16xf32> to vector<8x16xf32>
    %52 = arith.mulf %29, %51 : vector<8x16xf32>
    %cst_27 = arith.constant dense<0.000000e+00> : vector<8xf32>
    %53 = vector.multi_reduction <add>, %52, %cst_27 [1] : vector<8x16xf32> to vector<8xf32>
    %54 = vector.shape_cast %53 : vector<8xf32> to vector<8x1xf32>
    %55 = arith.addf %50, %54 : vector<8x1xf32>
    %c0_28 = arith.constant 0 : index
    %c0_29 = arith.constant 0 : index
    %56 = vector.load %arg9[%c0_28, %c0_29] : memref<8x1xf32, #tpu.memory_space<vmem>>, vector<8x1xf32>
    tpu.vector_store %arg9[%c0_28, %c0_29], %55 {strides = array<i32>} : memref<8x1xf32, #tpu.memory_space<vmem>>, vector<8x1xf32>,
    return
  }
  func.func @transform_0(%arg0: i32) -> (i32, i32) {
    %c0_i32 = arith.constant 0 : i32
    %c0_i32_0 = arith.constant 0 : i32
    return %arg0, %c0_i32 : i32, i32
  }
  func.func @transform_1(%arg0: i32) -> (i32, i32) {
    %c0_i32 = arith.constant 0 : i32
    %c0_i32_0 = arith.constant 0 : i32
    return %arg0, %c0_i32 : i32, i32
  }
  func.func @transform_2(%arg0: i32) -> (i32, i32) {
    %c0_i32 = arith.constant 0 : i32
    %c0_i32_0 = arith.constant 0 : i32
    %c0_i32_1 = arith.constant 0 : i32
    return %c0_i32, %c0_i32_0 : i32, i32
  }
  func.func @transform_3(%arg0: i32) -> (i32, i32) {
    %c0_i32 = arith.constant 0 : i32
    %c0_i32_0 = arith.constant 0 : i32
    %c0_i32_1 = arith.constant 0 : i32
    return %c0_i32, %c0_i32_0 : i32, i32
  }
  func.func @transform_4(%arg0: i32) -> (i32, i32) {
    %c0_i32 = arith.constant 0 : i32
    %c0_i32_0 = arith.constant 0 : i32
    %c0_i32_1 = arith.constant 0 : i32
    return %c0_i32, %c0_i32_0 : i32, i32
  }
  func.func @transform_5(%arg0: i32) -> (i32, i32) {
    %c0_i32 = arith.constant 0 : i32
    %c0_i32_0 = arith.constant 0 : i32
    %c0_i32_1 = arith.constant 0 : i32
    return %c0_i32, %c0_i32_0 : i32, i32
  }
  func.func @transform_6(%arg0: i32) -> (i32, i32) {
    %c0_i32 = arith.constant 0 : i32
    %c0_i32_0 = arith.constant 0 : i32
    %c0_i32_1 = arith.constant 0 : i32
    return %c0_i32, %c0_i32_0 : i32, i32
  }
  func.func @transform_7(%arg0: i32) -> (i32, i32) {
    %c0_i32 = arith.constant 0 : i32
    %c0_i32_0 = arith.constant 0 : i32
    return %arg0, %c0_i32 : i32, i32
  }
  func.func @transform_8(%arg0: i32) -> (i32, i32) {
    %c0_i32 = arith.constant 0 : i32
    %c0_i32_0 = arith.constant 0 : i32
    return %arg0, %c0_i32 : i32, i32
  }
}

</mosaic_0001>

<bundles_post_ra>
// kernel: tpu_custom_call.1
= control target key start
LH: loop header
LB: loop body
LE: loop exit
PB: predicated region body
PF: predicated region fallthrough
CT: control target
= control target key end

     0   :  { %s583_s29 = smov 0   ;;  %s630_s0 = inlined_call_operand.vmem [shape: f32[32,16], index: 0, kind: input, shape index: {}]   ;;  %s631_s1 = inlined_call_operand.vmem [shape: f32[32,16], index: 1, kind: input, shape index: {}]   ;;  %s632_s2 = inlined_call_operand.vmem [shape: f32[1,16], index: 2, kind: input, shape index: {}]   ;;  %s633_s3 = inlined_call_operand.vmem [shape: f32[1,16], index: 3, kind: input, shape index: {}]   ;;  %s634_s4 = inlined_call_operand.vmem [shape: f32[1,16], index: 4, kind: input, shape index: {}]   ;;  %s635_s5 = inlined_call_operand.vmem [shape: f32[1,16], index: 5, kind: input, shape index: {}]   ;;  %s636_s6 = inlined_call_operand.<no memory space> [shape: f32[1,1], index: 6, kind: input, shape index: {}]   ;;  %s637_s7 = inlined_call_operand.vmem [shape: f32[32,1], index: 7, kind: output, shape index: {0}]   ;;  %s638_s8 = inlined_call_operand.vmem [shape: f32[32,1], index: 8, kind: output, shape index: {1}]  }
   0x1   :  { %14 = sst [smem:[#allocation2]] %s636_s6 }
   0x2 LB: > { %s500_s30 = sadd.s32 4294967295, %s533_s29   ;;  %p504_p0 = scmp.ge.s32.totalorder %s533_s29, 1  ;;  %s533_s29 = sphi %s583_s29, %s20_s29  }
   0x3   : > { %p274_p1 = scmp.lt.s32.totalorder %s533_s29, 5 }
   0x5   : > { %p275_p2 = pnand %p504_p0, %p274_p1 }
   0x6   : > { %p314_p3 = scmp.lt.s32.totalorder (!%p275_p2), %s500_s30, 3  ;;  %vm333_vm0 = vcmask (!%p275_p2), 130048   ;;  %v511_v15 = vld [vmem:[%s634_s4] ss:$0 sm:$0xff] (!%p275_p2)  ;;  %s377_s23 = sld [smem:[#allocation2]] (!%p275_p2)  ;;  %vm380_vm3 = vcmask (!%p275_p2), 7168  }
   0x7   : > { %278 = sbr.rel (%p275_p2) target bundleno = 339 (0x153), region = 48  ;;  %v509_v16 = vld [vmem:[%s632_s2] ss:$0 sm:$0xff] (!%p275_p2) }
   0x8   : > { %v510_v19 = vld [vmem:[%s633_s3] ss:$0 sm:$0xff] (!%p275_p2) }
   0x9   : > { %v512_v25 = vld [vmem:[%s635_s5] ss:$0 sm:$0xff] (!%p275_p2) }
   0xc   : > { %v378_v30 = vstv (!%p275_p2), %s377_s23 }
   0xe   : > { %s640_s30 = smov (!%p314_p3, %s500_s30), 3 }
   0xf   : > { %s591_s9 = sshll.u32 %s640_s30, 3 }
  0x10   : > { %s321_s11 = scalar_lea.vmem %s631_s1, %s591_s9  ;;  %s317_s14 = scalar_lea.vmem %s630_s0, %s591_s9 }
  0x11   : > { %v331_v0 = vld [vmem:[%s321_s11] sm:$0xff]  ;;  %s325_s26 = scalar_lea.vmem %s637_s7, %s591_s9  ;;  %s329_s30 = scalar_lea.vmem %s638_s8, %s591_s9 }
  0x12   : > { %v330_v1 = vld [vmem:[%s317_s14] sm:$0xff]  ;;  %v342_v2 = vmul.f32 %v331_v0, %v331_v0 }
  0x13   : > { %v332_v3 = vmul.f32 %v330_v1, %v330_v1 }
  0x14   : > { %v343_v4 = vsel %vm333_vm0, %v342_v2, 0.0 }
  0x15   : > { %344 = vadd.xlane.f32.xlu0 %v343_v4  ;;  %v334_v5 = vsel %vm333_vm0, %v332_v3, 0.0 }
  0x19   : > { %335 = vadd.xlane.f32.xlu0 %v334_v5 }
  0xa2   : > { %v345_v6 = vpop.xlane.xlu0 %344 }
  0xa3   : > { %v346_v7 = vmax.f32 %v345_v6, 1e-30  ;;  %vm348_vm1 = vcmp.gt.f32.partialorder %v345_v6, 4.0 }
  0xa5   : > { %523 = vrsqrt.f32 %v346_v7 }
  0xa6   : > { %v336_v8 = vpop.xlane.xlu0 %335 }
  0xa7   : > { %v337_v9 = vmax.f32 %v336_v8, 1e-30  ;;  %vm339_vm2 = vcmp.gt.f32.partialorder %v336_v8, 1.0 }
  0xa9   : > { %525 = vrsqrt.f32 %v337_v9 }
  0xaf   : > { %v524_v10 = vpop.eup %523 }
  0xb0   : > { %v349_v11 = vmul.f32 2.0, %v524_v10 }
  0xb2   : > { %v350_v12 = vsel %vm348_vm1, %v349_v11, 1.0 }
  0xb3   : > { %v526_v13 = vpop.eup %525  ;;  %v351_v17 = vmul.f32 %v350_v12, %v331_v0 }
  0xb4   : > { %v340_v14 = vsel %vm339_vm2, %v526_v13, 1.0 }
  0xb5   : > { %v341_v18 = vmul.f32 %v340_v14, %v330_v1  ;;  %v372_v24 = vmul.f32 %v510_v19, %v351_v17  ;;  %v398_v27 = vmul.f32 %v512_v25, %v351_v17 }
  0xb7   : > { %v388_v20 = vmul.f32 %v511_v15, %v341_v18  ;;  %v362_v21 = vmul.f32 %v509_v16, %v341_v18  ;;  %v373_v26 = vsel %vm333_vm0, %v372_v24, 0.0  ;;  %v399_v28 = vsel %vm333_vm0, %v398_v27, 0.0 }
  0xb9   : > { %v389_v22 = vsel %vm333_vm0, %v388_v20, 0.0  ;;  %v363_v23 = vsel %vm333_vm0, %v362_v21, 0.0 }
  0xba   : > { %390 = vadd.xlane.f32.xlu0 %v389_v22  ;;  %364 = vadd.xlane.f32.xlu1 %v363_v23 }
  0xbe   : > { %374 = vadd.xlane.f32.xlu1 %v373_v26 }
  0xc2   : > { %400 = vadd.xlane.f32.xlu1 %v399_v28 }
 0x147   : > { %v365_v29 = vpop.xlane.xlu1 %364  ;;  %v391_v34 = vpop.xlane.xlu0 %390 }
 0x14b   : > { %v375_v31 = vpop.xlane.xlu1 %374 }
 0x14c   : > { %v376_v32 = vadd.f32 %v375_v31, %v365_v29 }
 0x14e   : > { %v379_v33 = vadd.f32 %v378_v30, %v376_v32 }
 0x14f   : > { %v401_v35 = vpop.xlane.xlu1 %400 }
 0x150   : > { %381 = vst.msk [vmem:[%s325_s26] sm:$0xff] %vm380_vm3, %v379_v33  ;;  %v402_v36 = vadd.f32 %v401_v35, %v391_v34 }
 0x152   : > { %403 = vst.msk [vmem:[%s329_s30] sm:$0xff] %vm380_vm3, %v402_v36 }
 0x153 PF: > { %s20_s29 = sadd.s32 1, %s533_s29  }
 0x154   : > { %p17_p4 = scmp.ge.s32.totalorder %s20_s29, 6  }
 0x156   :  { %19 = sbr.rel (!%p17_p4) target bundleno = 2 (0x2), region = 93 }

</bundles_post_ra>
